<compile_context>
chip_gen: v7x
topology: tpu7x:2x2x1
jax: 0.10.0
libtpu: 0.0.40
codegen_flags: <defaults>
</compile_context>

<pallas_src>
import jax
import jax.numpy as jnp
from jax.experimental import pallas as pl
from jax.experimental.pallas import tpu as pltpu

LORA_SCALE = 1.0
_VMEM_BUDGET = 48 * 1024 * 1024  # stay well under v7x's 64 MiB physical VMEM


def _round_up(x, m):
    return (x + m - 1) // m * m


# --------------------------------------------------------------------------- #
# Kernel: one MXU matmul + bias per (tm, tn) output tile.                      #
# --------------------------------------------------------------------------- #
def _fused_matmul_kernel(x_ref, w_ref, b_ref, o_ref):
    # Cast activations to the weight dtype inside VMEM (free vs. an extra HBM pass);
    # the MXU accumulates in f32 regardless.
    x = x_ref[...].astype(w_ref.dtype)
    acc = jnp.dot(x, w_ref[...], preferred_element_type=jnp.float32)
    o_ref[...] = (acc + b_ref[...]).astype(o_ref.dtype)


# --------------------------------------------------------------------------- #
# One-time weight fold (plain JAX, reused across calls at inference).          #
# --------------------------------------------------------------------------- #
def fold_params(params, lora_scale=LORA_SCALE, weight_dtype=jnp.bfloat16):
    """Collapse the 4 Linears + 3 LoRA pairs into one (D, D) weight + (1, D) bias.

    The fold itself runs in f32; only the final folded weight is cast (bf16 by default
    -> halves HBM traffic and resident-weight VMEM). The folded bias stays f32.
    """
    f32 = jnp.float32
    w_sum = (params["wq"] + params["wk"] + params["wv"]).astype(f32)
    b_sum = (params["bq"] + params["bk"] + params["bv"]).astype(f32)
    w_eff = w_sum + lora_scale * (
        params["lora_q_A"].astype(f32) @ params["lora_q_B"].astype(f32)
        + params["lora_k_A"].astype(f32) @ params["lora_k_B"].astype(f32)
        + params["lora_v_A"].astype(f32) @ params["lora_v_B"].astype(f32)
    )
    w_fold = (w_eff @ params["wo"].astype(f32)).astype(weight_dtype)      # (D, D)
    b_fold = b_sum @ params["wo"].astype(f32) + params["bo"].astype(f32)  # (1, D), f32
    return w_fold, b_fold


# --------------------------------------------------------------------------- #
# Tile selection (VMEM-budget aware, v5e/v6e/v7x friendly).                    #
# --------------------------------------------------------------------------- #
def _select_tiles(M, Dp_in, Dp_out, x_bytes, w_bytes, o_bytes, block_m):
    sub = 16 if x_bytes == 2 else 8
    tm = min(block_m, _round_up(M, sub))
    if tm >= M and M > sub:
        # Split M so the "parallel" grid axis has >= 2 steps (both v7x TensorCores work).
        tm = _round_up((M + 1) // 2, sub)

    def vmem(tm_, tn_, wb_):
        return (2 * tm_ * Dp_in * x_bytes      # x tile, double buffered
                + wb_ * Dp_in * tn_ * w_bytes  # weight column block(s)
                + 2 * tn_ * 4                  # bias (f32)
                + 2 * tm_ * tn_ * o_bytes)     # out tile, double buffered

    tn, w_bufs = Dp_out, 1                     # weight fully VMEM-resident (common case)
    if vmem(tm, tn, w_bufs) > _VMEM_BUDGET:
        # Large-D fallback (v7x 64 MiB VMEM): tile the output-feature dim. N is the
        # outermost grid axis, so each weight column block is read from HBM exactly once
        # and reused across all M tiles; stream (double-buffer) those blocks.
        w_bufs = 2
        tn = min(Dp_out, max(256, _round_up(Dp_out // 2, 256)))
        while tn > 256 and vmem(tm, tn, w_bufs) > _VMEM_BUDGET:
            tn = max(256, _round_up(tn // 2, 256))
        while tm > sub and vmem(tm, tn, w_bufs) > _VMEM_BUDGET:
            tm = max(sub, _round_up(tm // 2, sub))
    return tm, tn, w_bufs, vmem(tm, tn, w_bufs)


# --------------------------------------------------------------------------- #
# Wrapper: (conditional) padding, tiling, pallas_call.                         #
# --------------------------------------------------------------------------- #
def simple_cross_attention(x, w_fold, b_fold, *, block_m=512, out_dtype=None):
    """x: (B, S, D). w_fold: (D, Dout). b_fold: (1, Dout) f32. Returns (B, S, Dout)."""
    B, S, D = x.shape
    Dout = w_fold.shape[1]
    M = B * S
    out_dtype = x.dtype if out_dtype is None else out_dtype

    x2d = x.reshape(M, D)
    b2d = b_fold.reshape(1, Dout).astype(jnp.float32)

    # Pad the feature dims ONLY when they are not lane-aligned (multiple of 128).
    # In the aligned case x / w / b go straight in and out comes straight back:
    # no extra HBM read+write passes. M is never padded.
    Dp_in, Dp_out = _round_up(D, 128), _round_up(Dout, 128)
    if Dp_in != D:
        x2d = jnp.zeros((M, Dp_in), x.dtype).at[:, :D].set(x2d)
    if Dp_in != D or Dp_out != Dout:
        w_fold = jnp.zeros((Dp_in, Dp_out), w_fold.dtype).at[:D, :Dout].set(w_fold)
        b2d = jnp.zeros((1, Dp_out), jnp.float32).at[:, :Dout].set(b2d)

    x_bytes = jnp.dtype(x.dtype).itemsize
    w_bytes = jnp.dtype(w_fold.dtype).itemsize
    o_bytes = jnp.dtype(out_dtype).itemsize
    tm, tn, w_bufs, vmem_need = _select_tiles(
        M, Dp_in, Dp_out, x_bytes, w_bytes, o_bytes, block_m)

    n_m = pl.cdiv(M, tm)        # partial last M block: stores are masked by Pallas
    n_n = pl.cdiv(Dp_out, tn)
    grid = (n_n, n_m)           # N outermost: weight column block loaded once, reused over M

    vmem_limit = int(min(max(vmem_need * 3 // 2, 32 * 1024 * 1024), 64 * 1024 * 1024))
    cost = pl.CostEstimate(
        flops=2 * M * Dp_in * Dp_out,
        transcendentals=0,
        bytes_accessed=(M * Dp_in * x_bytes * n_n
                        + Dp_in * Dp_out * w_bytes
                        + M * Dp_out * o_bytes
                        + Dp_out * 4),
    )

    def _run(use_pipeline_mode):
        def spec(shape, imap, bufs):
            if use_pipeline_mode and bufs == 1:
                return pl.BlockSpec(shape, imap, pipeline_mode=pl.Buffered(1))
            return pl.BlockSpec(shape, imap)

        return pl.pallas_call(
            _fused_matmul_kernel,
            out_shape=jax.ShapeDtypeStruct((M, Dp_out), out_dtype),
            grid=grid,
            in_specs=[
                spec((tm, Dp_in), lambda n, m: (m, 0), 2),       # x: streamed over M
                spec((Dp_in, tn), lambda n, m: (0, n), w_bufs),  # folded weight
                spec((1, tn), lambda n, m: (0, n), 1),           # folded bias (f32)
            ],
            out_specs=spec((tm, tn), lambda n, m: (m, n), 2),
            compiler_params=pltpu.CompilerParams(
                dimension_semantics=("parallel", "parallel"),
                vmem_limit_bytes=vmem_limit,
            ),
            cost_estimate=cost,
        )(x2d, w_fold, b2d)

    if w_bufs == 1:
        # Single-buffer the VMEM-resident weight/bias (constant index maps); retry with
        # default double-buffering if this jax build rejects pipeline_mode=Buffered(1).
        try:
            out2d = _run(True)
        except Exception:  # pragma: no cover - older jax without Buffered(1) support
            out2d = _run(False)
    else:
        out2d = _run(False)

    if Dp_out != Dout:
        out2d = out2d[:, :Dout]
    return out2d.reshape(B, S, Dout)


# --------------------------------------------------------------------------- #
# Parameter init (weights stored as (in, out), i.e. pre-transposed vs torch).  #
# --------------------------------------------------------------------------- #
def init_params(key, dim, lora_rank=4, lora_b_scale=0.0):
    """lora_b_scale=0.0 matches the torch module's zero-init of B; the self-test uses
    a nonzero value so the LoRA path actually contributes to the allclose check."""
    ks = jax.random.split(key, 14)
    bound = 1.0 / jnp.sqrt(dim)  # torch.nn.Linear uniform bound

    def linear(kw, kb):
        w = jax.random.uniform(kw, (dim, dim), jnp.float32, -bound, bound)
        b = jax.random.uniform(kb, (1, dim), jnp.float32, -bound, bound)
        return w, b

    wq, bq = linear(ks[0], ks[1])
    wk, bk = linear(ks[2], ks[3])
    wv, bv = linear(ks[4], ks[5])
    wo, bo = linear(ks[6], ks[7])

    def lora_B(k):
        return lora_b_scale * jax.random.normal(k, (lora_rank, dim), jnp.float32)

    return dict(
        wq=wq, bq=bq, wk=wk, bk=bk, wv=wv, bv=bv, wo=wo, bo=bo,
        lora_q_A=0.01 * jax.random.normal(ks[8], (dim, lora_rank), jnp.float32),
        lora_q_B=lora_B(ks[11]),
        lora_k_A=0.01 * jax.random.normal(ks[9], (dim, lora_rank), jnp.float32),
        lora_k_B=lora_B(ks[12]),
        lora_v_A=0.01 * jax.random.normal(ks[10], (dim, lora_rank), jnp.float32),
        lora_v_B=lora_B(ks[13]),
    )


# --------------------------------------------------------------------------- #
# Pure-JAX reference with the ORIGINAL (unfused) module structure.             #
# --------------------------------------------------------------------------- #
def _reference(x, p, lora_scale=LORA_SCALE):
    B, S, D = x.shape
    x2 = x.reshape(B * S, D)
    q = x2 @ p["wq"] + p["bq"]
    k = x2 @ p["wk"] + p["bk"]
    v = x2 @ p["wv"] + p["bv"]
    q = q + (x2 @ p["lora_q_A"] @ p["lora_q_B"]) * lora_scale
    k = k + (x2 @ p["lora_k_A"] @ p["lora_k_B"]) * lora_scale
    v = v + (x2 @ p["lora_v_A"] @ p["lora_v_B"]) * lora_scale
    return ((q + k + v) @ p["wo"] + p["bo"]).reshape(B, S, D)


if __name__ == "__main__":
    key = jax.random.PRNGKey(0)
    k_x, k_p, k_x2, k_p2 = jax.random.split(key, 4)

    # --- Case 1: lane-aligned feature dim (no padding / no extra copies) -----
    dim, batch, seq = 128, 2, 128            # M = 256 -> two 128-row M tiles
    x = jax.random.normal(k_x, (batch, seq, dim), jnp.float32)
    params = init_params(k_p, dim, lora_rank=4, lora_b_scale=0.01)  # nonzero LoRA B
    ref = _reference(x, params)

    # f32 folded weight: tight tolerance vs. the unfused reference.
    w32, b32 = fold_params(params, weight_dtype=jnp.float32)
    out_f32 = jax.block_until_ready(simple_cross_attention(x, w32, b32))
    assert out_f32.shape == (batch, seq, dim)
    assert jnp.allclose(out_f32, ref, atol=1e-3, rtol=1e-3)

    # bf16 folded weight (default path): f32 MXU accumulation, looser tolerance.
    wbf, bbf = fold_params(params)
    out_bf16 = jax.block_until_ready(simple_cross_attention(x, wbf, bbf))
    assert jnp.allclose(out_bf16, ref, atol=5e-2, rtol=5e-2)

    # --- Case 2: unaligned D + partial last M block (masked stores) ----------
    dim2, batch2, seq2 = 96, 2, 9            # D % 128 != 0, M = 18 -> partial M tile
    x2 = jax.random.normal(k_x2, (batch2, seq2, dim2), jnp.float32)
    params2 = init_params(k_p2, dim2, lora_rank=4, lora_b_scale=0.01)
    w2, b2 = fold_params(params2, weight_dtype=jnp.float32)
    out2 = jax.block_until_ready(simple_cross_attention(x2, w2, b2))
    assert out2.shape == (batch2, seq2, dim2)
    assert jnp.allclose(out2, _reference(x2, params2), atol=1e-3, rtol=1e-3)

    print("KERNEL_OK")
</pallas_src>

<mosaic_0001>
module attributes {stable_mosaic.version = 11 : i64} {
  func.func @_fused_matmul_kernel(%arg0: i32, %arg1: i32, %arg2: memref<128x128xf32, #tpu.memory_space<vmem>>, %arg3: memref<128x128xf32, #tpu.memory_space<vmem>>, %arg4: memref<1x128xf32, #tpu.memory_space<vmem>>, %arg5: memref<128x128xf32, #tpu.memory_space<vmem>>) attributes {dimension_semantics = [#tpu.dimension_semantics<parallel>, #tpu.dimension_semantics<parallel>], iteration_bounds = array<i64: 1, 2>, scalar_prefetch = 0 : i64, scratch_operands = 0 : i64, tpu.core_type = #tpu.core_type<tc>, window_params = [{transform_indices = @transform_0, window_bounds = array<i64: 128, 128>}, {pipeline_mode = #tpu.pipeline_mode<synchronous>, transform_indices = @transform_1, window_bounds = array<i64: 128, 128>}, {pipeline_mode = #tpu.pipeline_mode<synchronous>, transform_indices = @transform_2, window_bounds = array<i64: 1, 128>}, {transform_indices = @transform_3, window_bounds = array<i64: 128, 128>}]} {
    %c0 = arith.constant 0 : index
    %c0_0 = arith.constant 0 : index
    %0 = vector.load %arg2[%c0, %c0_0] : memref<128x128xf32, #tpu.memory_space<vmem>>, vector<128x128xf32>
    %c0_1 = arith.constant 0 : index
    %c0_2 = arith.constant 0 : index
    %1 = vector.load %arg3[%c0_1, %c0_2] : memref<128x128xf32, #tpu.memory_space<vmem>>, vector<128x128xf32>
    %cst = arith.constant dense<0.000000e+00> : vector<128x128xf32>
    %2 = tpu.matmul %0, %1, %cst {dimension_numbers = #tpu.dot_dimension_numbers<[1], [0], [0], [1], [0, 0, 1, 1], [], []>} : vector<128x128xf32>, vector<128x128xf32>, vector<128x128xf32> -> vector<128x128xf32>
    %c0_3 = arith.constant 0 : index
    %c0_4 = arith.constant 0 : index
    %3 = vector.load %arg4[%c0_3, %c0_4] : memref<1x128xf32, #tpu.memory_space<vmem>>, vector<1x128xf32>
    %4 = vector.broadcast %3 : vector<1x128xf32> to vector<128x128xf32>
    %5 = arith.addf %2, %4 : vector<128x128xf32>
    %c0_5 = arith.constant 0 : index
    %c0_6 = arith.constant 0 : index
    %6 = vector.load %arg5[%c0_5, %c0_6] : memref<128x128xf32, #tpu.memory_space<vmem>>, vector<128x128xf32>
    tpu.vector_store %arg5[%c0_5, %c0_6], %5 {strides = array<i32>} : memref<128x128xf32, #tpu.memory_space<vmem>>, vector<128x128xf32>,
    return
  }
  func.func @transform_0(%arg0: i32, %arg1: i32) -> (i32, i32) {
    %c0_i32 = arith.constant 0 : i32
    %c0_i32_0 = arith.constant 0 : i32
    return %arg1, %c0_i32 : i32, i32
  }
  func.func @transform_1(%arg0: i32, %arg1: i32) -> (i32, i32) {
    %c0_i32 = arith.constant 0 : i32
    %c0_i32_0 = arith.constant 0 : i32
    return %c0_i32, %arg0 : i32, i32
  }
  func.func @transform_2(%arg0: i32, %arg1: i32) -> (i32, i32) {
    %c0_i32 = arith.constant 0 : i32
    %c0_i32_0 = arith.constant 0 : i32
    return %c0_i32, %arg0 : i32, i32
  }
  func.func @transform_3(%arg0: i32, %arg1: i32) -> (i32, i32) {
    %c0_i32 = arith.constant 0 : i32
    return %arg1, %arg0 : i32, i32
  }
}

module attributes {stable_mosaic.version = 11 : i64} {
  func.func @_fused_matmul_kernel(%arg0: i32, %arg1: i32, %arg2: memref<128x128xf32, #tpu.memory_space<vmem>>, %arg3: memref<128x128xf32, #tpu.memory_space<vmem>>, %arg4: memref<1x128xf32, #tpu.memory_space<vmem>>, %arg5: memref<128x128xf32, #tpu.memory_space<vmem>>) attributes {dimension_semantics = [#tpu.dimension_semantics<parallel>, #tpu.dimension_semantics<parallel>], iteration_bounds = array<i64: 1, 2>, scalar_prefetch = 0 : i64, scratch_operands = 0 : i64, tpu.core_type = #tpu.core_type<tc>, window_params = [{transform_indices = @transform_0, window_bounds = array<i64: 128, 128>}, {transform_indices = @transform_1, window_bounds = array<i64: 128, 128>}, {transform_indices = @transform_2, window_bounds = array<i64: 1, 128>}, {transform_indices = @transform_3, window_bounds = array<i64: 128, 128>}]} {
    %c0 = arith.constant 0 : index
    %c0_0 = arith.constant 0 : index
    %0 = vector.load %arg2[%c0, %c0_0] : memref<128x128xf32, #tpu.memory_space<vmem>>, vector<128x128xf32>
    %c0_1 = arith.constant 0 : index
    %c0_2 = arith.constant 0 : index
    %1 = vector.load %arg3[%c0_1, %c0_2] : memref<128x128xf32, #tpu.memory_space<vmem>>, vector<128x128xf32>
    %cst = arith.constant dense<0.000000e+00> : vector<128x128xf32>
    %2 = tpu.matmul %0, %1, %cst {dimension_numbers = #tpu.dot_dimension_numbers<[1], [0], [0], [1], [0, 0, 1, 1], [], []>} : vector<128x128xf32>, vector<128x128xf32>, vector<128x128xf32> -> vector<128x128xf32>
    %c0_3 = arith.constant 0 : index
    %c0_4 = arith.constant 0 : index
    %3 = vector.load %arg4[%c0_3, %c0_4] : memref<1x128xf32, #tpu.memory_space<vmem>>, vector<1x128xf32>
    %4 = vector.broadcast %3 : vector<1x128xf32> to vector<128x128xf32>
    %5 = arith.addf %2, %4 : vector<128x128xf32>
    %c0_5 = arith.constant 0 : index
    %c0_6 = arith.constant 0 : index
    %6 = vector.load %arg5[%c0_5, %c0_6] : memref<128x128xf32, #tpu.memory_space<vmem>>, vector<128x128xf32>
    tpu.vector_store %arg5[%c0_5, %c0_6], %5 {strides = array<i32>} : memref<128x128xf32, #tpu.memory_space<vmem>>, vector<128x128xf32>,
    return
  }
  func.func @transform_0(%arg0: i32, %arg1: i32) -> (i32, i32) {
    %c0_i32 = arith.constant 0 : i32
    %c0_i32_0 = arith.constant 0 : i32
    return %arg1, %c0_i32 : i32, i32
  }
  func.func @transform_1(%arg0: i32, %arg1: i32) -> (i32, i32) {
    %c0_i32 = arith.constant 0 : i32
    %c0_i32_0 = arith.constant 0 : i32
    return %c0_i32, %arg0 : i32, i32
  }
  func.func @transform_2(%arg0: i32, %arg1: i32) -> (i32, i32) {
    %c0_i32 = arith.constant 0 : i32
    %c0_i32_0 = arith.constant 0 : i32
    return %c0_i32, %arg0 : i32, i32
  }
  func.func @transform_3(%arg0: i32, %arg1: i32) -> (i32, i32) {
    %c0_i32 = arith.constant 0 : i32
    return %arg1, %arg0 : i32, i32
  }
}

</mosaic_0001>

<bundles_post_ra>
// kernel: tpu_custom_call.1
= control target key start
LH: loop header
LB: loop body
LE: loop exit
PB: predicated region body
PF: predicated region fallthrough
CT: control target
= control target key end

     0   :  { %8 = vsyncpa [#allocation3], 0  ;;  %s1239_s0 = inlined_call_operand.hbm [shape: f32[256,128], index: 0, kind: input, shape index: {}]   ;;  %s1240_s1 = inlined_call_operand.hbm [shape: f32[128,128], index: 1, kind: input, shape index: {}]   ;;  %s1241_s2 = inlined_call_operand.vmem [shape: f32[1,128], index: 2, kind: input, shape index: {}]   ;;  %s1242_s3 = inlined_call_operand.hbm [shape: f32[256,128], index: 3, kind: output, shape index: {}]  }
   0x1   :  { %10 = vsyncpa [#allocation3 + $0x1], 0 }
   0x2   :  { %11 = vsyncpa [#allocation6], 0 }
   0x3   :  { %12 = vsyncpa [#allocation4], 0 }
   0x4   :  { %14 = vsyncpa [#allocation4 + $0x1], 0  ;;  %s970_s12 = smov 0   ;;  %s972_s13 = smov 0  }
   0x5   :  { %s974_s14 = smov 0   ;;  %s976_s15 = smov 0  }
   0x6   :  { %s978_s16 = smov 0   ;;  %s980_s17 = smov 0  }
   0x7 LB: > { %s563_s18 = sadd.s32 4294967295, %s941_s17   ;;  %s564_s19 = sadd.s32 4294967294, %s941_s17   ;;  %s941_s17 = sphi %s980_s17, %s20_s17   ;;  %s937_s16 = sphi %s978_s16, %s1266_s16   ;;  %s933_s15 = sphi %s976_s15, %s1265_s15   ;;  %s929_s14 = sphi %s974_s14, %s1264_s14   ;;  %s925_s13 = sphi %s972_s13, %s1263_s13   ;;  %s921_s12 = sphi %s970_s12, %s1262_s12  }
   0x8   : > { %p52_p0 = scmp.ne.s32.totalorder %s925_s13, %s921_s12  ;;  %p1004_p1 = scmp.eq.s32.totalorder %s563_s18, 0 }
   0x9   : > { %p1008_p2 = scmp.eq.s32.totalorder %s563_s18, 1  ;;  %p136_p3 = scmp.eq.s32.totalorder %s564_s19, 1 }
   0xa   : > { %s1247_s20 = scalar_select %p1004_p1, 1, 0 }
   0xb   : > { %s1248_s21 = scalar_select %p1008_p2, 1, 0 }
   0xc   : > { %p1014_p4 = por %p1004_p1, %p52_p0  ;;  %p565_p5 = scmp.ge.s32.totalorder %s941_s17, 1 }
   0xd   : > { %p1019_p6 = por %p136_p3, %p52_p0  ;;  %p143_p7 = scmp.lt.s32.totalorder %s941_s17, 3 }
   0xe   : > { %s1249_s22 = scalar_select %p1014_p4, 1, 0 }
   0xf   : > { %s1250_s23 = scalar_select %p1019_p6, 1, 0 }
  0x10   : > { %p1024_p8 = pnand %p565_p5, %p143_p7  ;;  %s943_s25 = smov [#allocation5]  }
  0x11   : > { %s157_s26 = sshll.u32 %s943_s25, 4  ;;  %s29_s28 = sadd.s32 1, %s937_s16  ;;  %s158_s26 = int_to_ptr.vmem [resolvable:$true] %s157_s26 }
  0x12   : > { %s1251_s24 = scalar_select %p1024_p8, 1, 0 }
  0x13   : > { %p728_p9 = pneg %p1024_p8  ;;  %s797_s4 = scalar_lea.hbm %s1240_s1, 2048 }
  0x14   : > { %p798_p12 = scmp.ne.s32.totalorder %s1240_s1, %s797_s4  ;;  %p804_p5 = scmp.lt.u32.totalorder %s797_s4, %s1240_s1 }
  0x15   : > { %p1033_p11 = pnand %p728_p9, %p1004_p1 }
  0x17   : > { %p799_p13 = pneg %p1033_p11 }
  0x19   : > { %p800_p0 = pnand %p799_p13, %p798_p12 }
  0x1b   : > { %p801_p3 = pneg %p800_p0 }
  0x1d   : > { %p806_p7 = pnand %p804_p5, %p801_p3 }
  0x1f   : > { %809 = shalt.err (!%p806_p7)
}
  0x20   : > { %s810_s9 = scalar_lea.vmem %s158_s26, 2048  ;;  %p818_p1 = scmp.lt.s32.totalorder %s158_s26, %s158_s26 }
  0x21   : > { %p811_p9 = scmp.ne.s32.totalorder %s158_s26, %s810_s9  ;;  %p819_p4 = scmp.lt.s32.totalorder %s810_s9, %s810_s9 }
  0x23   : > { %p813_p10 = pnand %p811_p9, %p799_p13  ;;  %p820_p8 = por %p819_p4, %p818_p1 }
  0x25   : > { %p814_p6 = pneg %p813_p10 }
  0x27   : > { %p821_p2 = pnand %p820_p8, %p814_p6 }
  0x29   : > { %824 = shalt.err (!%p821_p2)
}
  0x2a   : > { %s944_s10 = smov 128   ;;  %s945_s11 = smov 8  }
  0x2b   : > { %731 = dma.hbm_to_vmem [thread:$0]  (!%p1033_p11), %s1240_s1, 2048, %s158_s26, [#allocation6], %s944_s10, %s944_s10, %s945_s11  }
  0x2c   : > { %p30_p1 = scmp.ge.s32.totalorder %s29_s28, 2  ;;  %s39_s25 = sadd.s32 1, %s929_s14 }
  0x2d   : > { %p46_p2 = scmp.ne.s32.totalorder %s929_s14, %s925_s13  ;;  %p47_p4 = scmp.eq.s32.totalorder %s941_s17, 0 }
  0x2e   : > { %s1268_s28 = smov (%p30_p1, %s29_s28), 0  ;;  %p1254_p8 = scmp.ne.s32.totalorder %s1248_s21, 0 }
  0x2f   : > { %p1063_p6 = por %p47_p4, %p46_p2  ;;  %s36_s30 = ssub.s32 %s937_s16, %s1268_s28 }
  0x30   : > { %p1069_p10 = por %p1254_p8, %p46_p2  ;;  %p741_p12 = scmp.lt.s32.totalorder %s941_s17, 2 }
  0x31   : > { %p37_p11 = scmp.eq.s32.totalorder %s36_s30, 0  ;;  %s177_s26 = sand.u32 1, %s929_s14  }
  0x32   : > { %s569_s4 = sshll.u32 %s177_s26, 7  ;;  %s582_s6 = sshll.u32 %s937_s16, 11 }
  0x33   : > { %s1078_s5 = scalar_select %p37_p11, %s929_s14, %s39_s25  }
  0x34   : > { %s1084_s9 = scalar_lea.hbm %s1239_s0, %s582_s6  ;;  %s181_s21 = scalar_lea.vmem [#allocation2], %s569_s4 }
  0x35   : > { %s188_s18 = sshll.u32 %s181_s21, 4  ;;  %p1090_p13 = pnand %p741_p12, %p1063_p6  ;;  %s1086_s18 = int_to_ptr.vmem [resolvable:$true] %s188_s18 }
  0x36   : > { %s1094_s25 = scalar_lea.sflag [#allocation3], %s177_s26  ;;  %s825_s30 = scalar_lea.hbm %s1084_s9, 2048 }
  0x37   : > { %p826_p0 = scmp.ne.s32.totalorder %s1084_s9, %s825_s30  ;;  %p827_p3 = pneg %p1090_p13 }
  0x38   : > { %s830_s29 = scalar_lea.hbm %s1239_s0, 4096  ;;  %p831_p9 = scmp.lt.u32.totalorder %s1084_s9, %s1239_s0 }
  0x39   : > { %p828_p5 = pnand %p827_p3, %p826_p0  ;;  %p832_p1 = scmp.lt.u32.totalorder %s830_s29, %s825_s30 }
  0x3a   : > { %p834_p4 = scmp.lt.u32.totalorder %s825_s30, %s1084_s9 }
  0x3b   : > { %p829_p7 = pneg %p828_p5  ;;  %p833_p2 = por %p832_p1, %p831_p9 }
  0x3d   : > { %p835_p6 = por %p834_p4, %p833_p2 }
  0x3f   : > { %p836_p8 = pnand %p835_p6, %p829_p7 }
  0x41   : > { %839 = shalt.err (!%p836_p8)
}
  0x42   : > { %s840_s26 = scalar_lea.vmem %s1086_s18, 2048  ;;  %s946_s21 = smov [#allocation2]  }
  0x43   : > { %p841_p12 = scmp.ne.s32.totalorder %s1086_s18, %s840_s26  ;;  %s845_s4 = sshll.u32 %s946_s21, 4  ;;  %s846_s4 = int_to_ptr.vmem [resolvable:$false] %s845_s4 }
  0x44   : > { %s847_s6 = scalar_lea.vmem %s846_s4, 4096  ;;  %p848_p5 = scmp.lt.s32.totalorder %s1086_s18, %s846_s4 }
  0x45   : > { %p843_p11 = pnand %p841_p12, %p827_p3  ;;  %p849_p9 = scmp.lt.s32.totalorder %s847_s6, %s840_s26 }
  0x47   : > { %p844_p0 = pneg %p843_p11  ;;  %p850_p1 = por %p849_p9, %p848_p5 }
  0x49   : > { %p851_p2 = pnand %p850_p1, %p844_p0 }
  0x4b   : > { %854 = shalt.err (!%p851_p2)
}
  0x4c   : > { %735 = dma.hbm_to_vmem [thread:$0]  (!%p1090_p13), %s1084_s9, 2048, %s1086_s18, %s1094_s25, %s944_s10, %s944_s10, %s945_s11  }
  0x4d   : > { %p1257_p3 = scmp.ne.s32.totalorder %s1251_s24, 0 }
  0x4e   : > { %s1128_s30 = sand.u32 (!%p1257_p3), 1, %s925_s13   ;;  %p1258_p7 = scmp.ne.s32.totalorder (!%p1257_p3), %s1249_s22, 0 }
  0x4f   : > { %200 = sbr.rel (%p1257_p3) target bundleno = 367 (0x16f), region = 32  ;;  %s573_s29 = sshll.u32 (!%p1257_p3), %s1128_s30, 7 }
  0x50   : > { %s203_s7 = scalar_lea.sflag (!%p1257_p3), [#allocation3], %s1128_s30  ;;  %s1134_s19 = scalar_lea.vmem (!%p1257_p3), [#allocation2], %s573_s29 }
  0x56   : > { %908 = dma.done.wait (%p1258_p7), %s203_s7, 2048  }
  0x57   : > { %910 = vsyncadd (%p1258_p7), %s203_s7, 4294965248  ;;  %p1259_p13 = scmp.ne.s32.totalorder %s1247_s20, 0 }
  0x59   : > { %912 = dma.done.wait (%p1259_p13), [#allocation6], 2048  }
  0x5a   : > { %914 = vsyncadd (%p1259_p13), [#allocation6], 4294965248  ;;  %v257_v0 = vld [vmem:[#allocation5] sm:$0xff]  ;;  %v258_v1 = vld [vmem:[#allocation5 + $0x8] sm:$0xff]  ;;  %s1165_s24 = scalar_lea.vmem [#allocation7], %s573_s29  ;;  %s583_s10 = sshll.u32 %s933_s15, 11 }
  0x5b   : > { %v259_v2 = vld [vmem:[#allocation5 + $0x10] sm:$0xff]  ;;  %v672_v3 = vpack.c.bf16 %v258_v1, %v257_v0  ;;  %v260_v4 = vld [vmem:[#allocation5 + $0x18] sm:$0xff]  ;;  %v261_v6 = vld [vmem:[#allocation5 + $0x20] sm:$0xff]  ;;  %s456_s11 = sshll.u32 %s1165_s24, 4  ;;  %s1184_s15 = scalar_lea.hbm %s1242_s3, %s583_s10  ;;  %s1186_s11 = int_to_ptr.vmem [resolvable:$true] %s456_s11 }
  0x5c   : > { %v676_v5 = vpack.c.bf16 %v260_v4, %v259_v2  ;;  %v262_v7 = vld [vmem:[#allocation5 + $0x28] sm:$0xff]  ;;  %v241_v9 = vld [vmem:[%s1134_s19] sm:$0xff]  ;;  %v263_v11 = vld [vmem:[#allocation5 + $0x30] sm:$0xff]  ;;  %s442_s25 = scalar_lea.sflag [#allocation4], %s1128_s30  ;;  %s855_s8 = scalar_lea.vmem %s1186_s11, 2048 }
  0x5d   : > { %673 = vmatprep.subr.bf16.mxu0 %v672_v3  ;;  %704 = vmatprep.subr.bf16.mxu1 %v672_v3  ;;  %v680_v8 = vpack.c.bf16 %v262_v7, %v261_v6  ;;  %v249_v10 = vld [vmem:[%s1134_s19 + $0x40] sm:$0xff]  ;;  %v264_v12 = vld [vmem:[#allocation5 + $0x38] sm:$0xff]  ;;  %v266_v15 = vld [vmem:[#allocation5 + $0x48] sm:$0xff]  ;;  %p856_p4 = scmp.ne.s32.totalorder %s1186_s11, %s855_s8  ;;  %s947_s26 = smov [#allocation7]  }
  0x5e   : > { %675 = vmatpush3.bf16.msra.mxu0 %v672_v3  ;;  %712 = vmatpush3.bf16.msra.mxu1 %v672_v3  ;;  %v684_v13 = vpack.c.bf16 %v264_v12, %v263_v11  ;;  %v265_v14 = vld [vmem:[#allocation5 + $0x40] sm:$0xff]  ;;  %v267_v17 = vld [vmem:[#allocation5 + $0x50] sm:$0xff]  ;;  %v268_v18 = vld [vmem:[#allocation5 + $0x58] sm:$0xff]  ;;  %s859_s21 = sshll.u32 %s947_s26, 4  ;;  %s860_s21 = int_to_ptr.vmem [resolvable:$false] %s859_s21 }
  0x5f   : > { %677 = vmatprep.subr.bf16.mxu0 %v676_v5  ;;  %705 = vmatprep.subr.bf16.mxu1 %v676_v5  ;;  %v688_v16 = vpack.c.bf16 %v266_v15, %v265_v14  ;;  %v692_v19 = vpack.c.bf16 %v268_v18, %v267_v17  ;;  %v269_v20 = vld [vmem:[#allocation5 + $0x60] sm:$0xff]  ;;  %v270_v21 = vld [vmem:[#allocation5 + $0x68] sm:$0xff]  ;;  %v271_v23 = vld [vmem:[#allocation5 + $0x70] sm:$0xff]  ;;  %p857_p6 = pnand %p856_p4, %p1069_p10  ;;  %s861_s4 = scalar_lea.vmem %s860_s21, 4096 }
  0x60   : > { %648 = vmatprep.mubr.f32.mxu0 %v241_v9  ;;  %660 = vmatprep.mubr.f32.mxu1 %v249_v10  ;;  %v696_v22 = vpack.c.bf16 %v270_v21, %v269_v20  ;;  %v272_v24 = vld [vmem:[#allocation5 + $0x78] sm:$0xff]  ;;  %v242_v26 = vld [vmem:[%s1134_s19 + $0x8] sm:$0xff]  ;;  %v243_v28 = vld [vmem:[%s1134_s19 + $0x10] sm:$0xff]  ;;  %p862_p12 = scmp.lt.s32.totalorder %s1186_s11, %s860_s21  ;;  %p863_p11 = scmp.lt.s32.totalorder %s861_s4, %s855_s8 }
  0x61   : > { %v700_v25 = vpack.c.bf16 %v272_v24, %v271_v23  ;;  %v250_v27 = vld [vmem:[%s1134_s19 + $0x48] sm:$0xff]  ;;  %v251_v29 = vld [vmem:[%s1134_s19 + $0x50] sm:$0xff]  ;;  %v244_v30 = vld [vmem:[%s1134_s19 + $0x18] sm:$0xff]  ;;  %p858_p8 = pneg %p857_p6 }
  0x62   : > { %679 = vmatpush3.bf16.msra.mxu0 %v676_v5  ;;  %713 = vmatpush3.bf16.msra.mxu1 %v676_v5  ;;  %v252_v31 = vld [vmem:[%s1134_s19 + $0x58] sm:$0xff]  ;;  %v245_v32 = vld [vmem:[%s1134_s19 + $0x20] sm:$0xff]  ;;  %v246_v34 = vld [vmem:[%s1134_s19 + $0x28] sm:$0xff]  ;;  %p864_p0 = por %p863_p11, %p862_p12 }
  0x63   : > { %681 = vmatprep.subr.bf16.mxu0 %v680_v8  ;;  %706 = vmatprep.subr.bf16.mxu1 %v680_v8  ;;  %v253_v33 = vld [vmem:[%s1134_s19 + $0x60] sm:$0xff]  ;;  %v254_v35 = vld [vmem:[%s1134_s19 + $0x68] sm:$0xff]  ;;  %v247_v36 = vld [vmem:[%s1134_s19 + $0x30] sm:$0xff] }
  0x64   : > { %v255_v37 = vld [vmem:[%s1134_s19 + $0x70] sm:$0xff]  ;;  %v248_v38 = vld [vmem:[%s1134_s19 + $0x38] sm:$0xff]  ;;  %v576_v40 = vld [vmem:[%s1241_s2] ss:$0 sm:$0xff]  ;;  %p865_p5 = pnand %p864_p0, %p858_p8 }
  0x65   : > { %v256_v39 = vld [vmem:[%s1134_s19 + $0x78] sm:$0xff] }
  0x66   : > { %683 = vmatpush3.bf16.msra.mxu0 %v680_v8  ;;  %714 = vmatpush3.bf16.msra.mxu1 %v680_v8 }
  0x67   : > { %685 = vmatprep.subr.bf16.mxu0 %v684_v13  ;;  %707 = vmatprep.subr.bf16.mxu1 %v684_v13 }
  0x6a   : > { %687 = vmatpush3.bf16.msra.mxu0 %v684_v13  ;;  %715 = vmatpush3.bf16.msra.mxu1 %v684_v13 }
  0x6b   : > { %689 = vmatprep.subr.bf16.mxu0 %v688_v16  ;;  %708 = vmatprep.subr.bf16.mxu1 %v688_v16 }
  0x6e   : > { %691 = vmatpush3.bf16.msra.mxu0 %v688_v16  ;;  %716 = vmatpush3.bf16.msra.mxu1 %v688_v16 }
  0x6f   : > { %693 = vmatprep.subr.bf16.mxu0 %v692_v19  ;;  %709 = vmatprep.subr.bf16.mxu1 %v692_v19 }
  0x72   : > { %695 = vmatpush3.bf16.msra.mxu0 %v692_v19  ;;  %717 = vmatpush3.bf16.msra.mxu1 %v692_v19 }
  0x73   : > { %697 = vmatprep.subr.bf16.mxu0 %v696_v22  ;;  %710 = vmatprep.subr.bf16.mxu1 %v696_v22 }
  0x76   : > { %699 = vmatpush3.bf16.msra.mxu0 %v696_v22  ;;  %718 = vmatpush3.bf16.msra.mxu1 %v696_v22 }
  0x77   : > { %701 = vmatprep.subr.bf16.mxu0 %v700_v25  ;;  %711 = vmatprep.subr.bf16.mxu1 %v700_v25 }
  0x7a   : > { %703 = vmatpush3.bf16.msra.mxu0 %v700_v25  ;;  %719 = vmatpush3.bf16.msra.mxu1 %v700_v25 }
  0x7d   : > { %649 = vmatmul.mubr.f32.vlgmr.msra.gmra.mrb[0].mxu0 %v242_v26  ;;  %661 = vmatmul.mubr.f32.vlgmr.msra.gmra.mrb[0].mxu1 %v250_v27 }
  0x7e   : > { %651 = vmatprep.mubr.f32.mxu0 %v243_v28  ;;  %663 = vmatprep.mubr.f32.mxu1 %v251_v29 }
  0x81   : > { %652 = vmatmul.mubr.f32.gmra.mrb[2].mxu0 %v244_v30  ;;  %664 = vmatmul.mubr.f32.gmra.mrb[2].mxu1 %v252_v31 }
  0x82   : > { %654 = vmatprep.mubr.f32.mxu0 %v245_v32  ;;  %666 = vmatprep.mubr.f32.mxu1 %v253_v33 }
  0x85   : > { %655 = vmatmul.mubr.f32.gmra.mrb[4].mxu0 %v246_v34  ;;  %667 = vmatmul.mubr.f32.gmra.mrb[4].mxu1 %v254_v35 }
  0x86   : > { %657 = vmatprep.mubr.f32.mxu0 %v247_v36  ;;  %669 = vmatprep.mubr.f32.mxu1 %v255_v37 }
  0x89   : > { %658 = vmatmul.mubr.f32.gmra.mrb[6].mxu0 %v248_v38  ;;  %670 = vmatmul.mubr.f32.gmra.mrb[6].mxu1 %v256_v39 }
 0x150   : > { %v650_v41 = vpop.f32.mrb[0].mxu0  ;;  %v662_v42 = vpop.f32.mrb[0].mxu1 }
 0x151   : > { %v352_v43 = vadd.f32 %v650_v41, %v576_v40  ;;  %v392_v44 = vadd.f32 %v662_v42, %v576_v40  ;;  %v346_v45 = vpop.f32.mrb[1].mxu0  ;;  %v386_v46 = vpop.f32.mrb[1].mxu1 }
 0x152   : > { %v347_v47 = vadd.f32 %v576_v40, %v346_v45  ;;  %v387_v48 = vadd.f32 %v576_v40, %v386_v46 }
 0x153   : > { %426 = vst [vmem:[%s1165_s24 + $0x8] sm:$0xff] %v352_v43  ;;  %434 = vst [vmem:[%s1165_s24 + $0x48] sm:$0xff] %v392_v44 }
 0x154   : > { %425 = vst [vmem:[%s1165_s24] sm:$0xff] %v347_v47  ;;  %433 = vst [vmem:[%s1165_s24 + $0x40] sm:$0xff] %v387_v48  ;;  %v653_v49 = vpop.f32.mrb[2].mxu0  ;;  %v665_v50 = vpop.f32.mrb[2].mxu1 }
 0x155   : > { %v362_v51 = vadd.f32 %v653_v49, %v576_v40  ;;  %v402_v52 = vadd.f32 %v665_v50, %v576_v40  ;;  %v356_v53 = vpop.f32.mrb[3].mxu0  ;;  %v396_v54 = vpop.f32.mrb[3].mxu1 }
 0x156   : > { %v357_v55 = vadd.f32 %v576_v40, %v356_v53  ;;  %v397_v56 = vadd.f32 %v576_v40, %v396_v54 }
 0x157   : > { %428 = vst [vmem:[%s1165_s24 + $0x18] sm:$0xff] %v362_v51  ;;  %436 = vst [vmem:[%s1165_s24 + $0x58] sm:$0xff] %v402_v52 }
 0x158   : > { %427 = vst [vmem:[%s1165_s24 + $0x10] sm:$0xff] %v357_v55  ;;  %435 = vst [vmem:[%s1165_s24 + $0x50] sm:$0xff] %v397_v56  ;;  %v656_v57 = vpop.f32.mrb[4].mxu0  ;;  %v668_v58 = vpop.f32.mrb[4].mxu1 }
 0x159   : > { %v372_v59 = vadd.f32 %v656_v57, %v576_v40  ;;  %v412_v60 = vadd.f32 %v668_v58, %v576_v40  ;;  %v366_v61 = vpop.f32.mrb[5].mxu0  ;;  %v406_v62 = vpop.f32.mrb[5].mxu1 }
 0x15a   : > { %v367_v63 = vadd.f32 %v576_v40, %v366_v61  ;;  %v407_v0 = vadd.f32 %v576_v40, %v406_v62 }
 0x15b   : > { %430 = vst [vmem:[%s1165_s24 + $0x28] sm:$0xff] %v372_v59  ;;  %438 = vst [vmem:[%s1165_s24 + $0x68] sm:$0xff] %v412_v60 }
 0x15c   : > { %429 = vst [vmem:[%s1165_s24 + $0x20] sm:$0xff] %v367_v63  ;;  %437 = vst [vmem:[%s1165_s24 + $0x60] sm:$0xff] %v407_v0  ;;  %v659_v1 = vpop.f32.mrb[6].mxu0  ;;  %v671_v2 = vpop.f32.mrb[6].mxu1 }
 0x15d   : > { %v382_v3 = vadd.f32 %v659_v1, %v576_v40  ;;  %v422_v4 = vadd.f32 %v671_v2, %v576_v40  ;;  %v376_v5 = vpop.f32.mrb[7].mxu0  ;;  %v416_v6 = vpop.f32.mrb[7].mxu1 }
 0x15e   : > { %v377_v7 = vadd.f32 %v576_v40, %v376_v5  ;;  %v417_v8 = vadd.f32 %v576_v40, %v416_v6 }
 0x15f   : > { %432 = vst [vmem:[%s1165_s24 + $0x38] sm:$0xff] %v382_v3  ;;  %440 = vst [vmem:[%s1165_s24 + $0x78] sm:$0xff] %v422_v4 }
 0x160   : > { %431 = vst [vmem:[%s1165_s24 + $0x30] sm:$0xff] %v377_v7  ;;  %439 = vst [vmem:[%s1165_s24 + $0x70] sm:$0xff] %v417_v8 }
 0x161   : > { %868 = shalt.err (!%p865_p5)
}
 0x162   : > { %s869_s6 = scalar_lea.hbm %s1184_s15, 2048  ;;  %s873_s19 = scalar_lea.hbm %s1242_s3, 4096 }
 0x163   : > { %p870_p9 = scmp.ne.s32.totalorder %s1184_s15, %s869_s6  ;;  %p874_p3 = scmp.lt.u32.totalorder %s1184_s15, %s1242_s3 }
 0x164   : > { %p875_p7 = scmp.lt.u32.totalorder %s873_s19, %s869_s6  ;;  %p877_p4 = scmp.lt.u32.totalorder %s869_s6, %s1184_s15 }
 0x165   : > { %p871_p1 = pnand %p870_p9, %p1069_p10 }
 0x166   : > { %p876_p13 = por %p875_p7, %p874_p3 }
 0x167   : > { %p872_p2 = pneg %p871_p1 }
 0x168   : > { %p878_p6 = por %p877_p4, %p876_p13 }
 0x16a   : > { %p879_p8 = pnand %p878_p6, %p872_p2 }
 0x16c   : > { %882 = shalt.err (!%p879_p8)
}
 0x16d   : > { %s948_s24 = smov 128   ;;  %s949_s10 = smov 8  }
 0x16e   : > { %726 = dma.vmem_to_hbm [thread:$0]  (%p1069_p10), %s1186_s11, 2048, %s1184_s15, %s442_s25, %s948_s24, %s948_s24, %s949_s10  }
 0x16f PF: > { %s471_s9 = sand.u32 1, %s921_s12   ;;  %p1260_p12 = scmp.ne.s32.totalorder %s1250_s23, 0 }
 0x170   : > { %p1261_p11 = scmp.ge.s32.totalorder %s941_s17, 2  ;;  %s472_s18 = scalar_lea.sflag [#allocation4], %s471_s9 }
 0x172   : > { %p737_p0 = pnand %p1261_p11, %p1260_p12 }
 0x174   : > { %916 = dma.done.wait (!%p737_p0), %s472_s18, 2048  }
 0x175   : > { %918 = vsyncadd (!%p737_p0), %s472_s18, 4294965248  ;;  %s20_s17 = sadd.s32 1, %s941_s17   ;;  %s1262_s12 = smov %s925_s13 }
 0x176   : > { %p17_p5 = scmp.ge.s32.totalorder %s20_s17, 4   ;;  %s1263_s13 = smov %s929_s14 }
 0x177   : > { %s1264_s14 = smov %s1078_s5  ;;  %s1265_s15 = smov %s937_s16 }
 0x178   : > { %s1266_s16 = smov %s1268_s28  ;;  %19 = sbr.rel (!%p17_p5) target bundleno = 7 (0x7), region = 85 }
 0x17f   :  { %477 = vsyncpa [#allocation3], 1 }
 0x180   :  { %479 = vsyncpa [#allocation3 + $0x1], 1 }
 0x181   :  { %480 = vsyncpa [#allocation6], 1 }
 0x182   :  { %481 = vsyncpa [#allocation4], 1 }
 0x183   :  { %483 = vsyncpa [#allocation4 + $0x1], 1 }

// kernel: tpu_custom_call.1
= control target key start
LH: loop header
LB: loop body
LE: loop exit
PB: predicated region body
PF: predicated region fallthrough
CT: control target
= control target key end

     0   :  { %8 = vsyncpa [#allocation3], 0  ;;  %s1239_s0 = inlined_call_operand.hbm [shape: f32[256,128], index: 0, kind: input, shape index: {}]   ;;  %s1240_s1 = inlined_call_operand.hbm [shape: f32[128,128], index: 1, kind: input, shape index: {}]   ;;  %s1241_s2 = inlined_call_operand.vmem [shape: f32[1,128], index: 2, kind: input, shape index: {}]   ;;  %s1242_s3 = inlined_call_operand.hbm [shape: f32[256,128], index: 3, kind: output, shape index: {}]  }
   0x1   :  { %10 = vsyncpa [#allocation3 + $0x1], 0 }
   0x2   :  { %11 = vsyncpa [#allocation6], 0 }
   0x3   :  { %12 = vsyncpa [#allocation4], 0 }
   0x4   :  { %14 = vsyncpa [#allocation4 + $0x1], 0  ;;  %s970_s12 = smov 0   ;;  %s972_s13 = smov 0  }
   0x5   :  { %s974_s14 = smov 0   ;;  %s976_s15 = smov 0  }
   0x6   :  { %s978_s16 = smov 0   ;;  %s980_s17 = smov 0  }
   0x7 LB: > { %s563_s18 = sadd.s32 4294967295, %s941_s17   ;;  %s564_s19 = sadd.s32 4294967294, %s941_s17   ;;  %s941_s17 = sphi %s980_s17, %s20_s17   ;;  %s937_s16 = sphi %s978_s16, %s1266_s16   ;;  %s933_s15 = sphi %s976_s15, %s1265_s15   ;;  %s929_s14 = sphi %s974_s14, %s1264_s14   ;;  %s925_s13 = sphi %s972_s13, %s1263_s13   ;;  %s921_s12 = sphi %s970_s12, %s1262_s12  }
   0x8   : > { %p52_p0 = scmp.ne.s32.totalorder %s925_s13, %s921_s12  ;;  %p1004_p1 = scmp.eq.s32.totalorder %s563_s18, 0 }
   0x9   : > { %p1008_p2 = scmp.eq.s32.totalorder %s563_s18, 1  ;;  %p136_p3 = scmp.eq.s32.totalorder %s564_s19, 1 }
   0xa   : > { %s1247_s20 = scalar_select %p1004_p1, 1, 0 }
   0xb   : > { %s1248_s21 = scalar_select %p1008_p2, 1, 0 }
   0xc   : > { %p1014_p4 = por %p1004_p1, %p52_p0  ;;  %p565_p5 = scmp.ge.s32.totalorder %s941_s17, 1 }
   0xd   : > { %p1019_p6 = por %p136_p3, %p52_p0  ;;  %p143_p7 = scmp.lt.s32.totalorder %s941_s17, 3 }
   0xe   : > { %s1249_s22 = scalar_select %p1014_p4, 1, 0 }
   0xf   : > { %s1250_s23 = scalar_select %p1019_p6, 1, 0 }
  0x10   : > { %p1024_p8 = pnand %p565_p5, %p143_p7  ;;  %s943_s25 = smov [#allocation5]  }
  0x11   : > { %s157_s26 = sshll.u32 %s943_s25, 4  ;;  %s29_s28 = sadd.s32 1, %s937_s16  ;;  %s158_s26 = int_to_ptr.vmem [resolvable:$true] %s157_s26 }
  0x12   : > { %s1251_s24 = scalar_select %p1024_p8, 1, 0 }
  0x13   : > { %p728_p9 = pneg %p1024_p8  ;;  %s797_s4 = scalar_lea.hbm %s1240_s1, 2048 }
  0x14   : > { %p798_p12 = scmp.ne.s32.totalorder %s1240_s1, %s797_s4  ;;  %p804_p5 = scmp.lt.u32.totalorder %s797_s4, %s1240_s1 }
  0x15   : > { %p1033_p11 = pnand %p728_p9, %p1004_p1 }
  0x17   : > { %p799_p13 = pneg %p1033_p11 }
  0x19   : > { %p800_p0 = pnand %p799_p13, %p798_p12 }
  0x1b   : > { %p801_p3 = pneg %p800_p0 }
  0x1d   : > { %p806_p7 = pnand %p804_p5, %p801_p3 }
  0x1f   : > { %809 = shalt.err (!%p806_p7)
}
  0x20   : > { %s810_s9 = scalar_lea.vmem %s158_s26, 2048  ;;  %p818_p1 = scmp.lt.s32.totalorder %s158_s26, %s158_s26 }
  0x21   : > { %p811_p9 = scmp.ne.s32.totalorder %s158_s26, %s810_s9  ;;  %p819_p4 = scmp.lt.s32.totalorder %s810_s9, %s810_s9 }
  0x23   : > { %p813_p10 = pnand %p811_p9, %p799_p13  ;;  %p820_p8 = por %p819_p4, %p818_p1 }
  0x25   : > { %p814_p6 = pneg %p813_p10 }
  0x27   : > { %p821_p2 = pnand %p820_p8, %p814_p6 }
  0x29   : > { %824 = shalt.err (!%p821_p2)
}
  0x2a   : > { %s944_s10 = smov 128   ;;  %s945_s11 = smov 8  }
  0x2b   : > { %731 = dma.hbm_to_vmem [thread:$0]  (!%p1033_p11), %s1240_s1, 2048, %s158_s26, [#allocation6], %s944_s10, %s944_s10, %s945_s11  }
  0x2c   : > { %p30_p1 = scmp.ge.s32.totalorder %s29_s28, 2  ;;  %s39_s25 = sadd.s32 1, %s929_s14 }
  0x2d   : > { %p46_p2 = scmp.ne.s32.totalorder %s929_s14, %s925_s13  ;;  %p47_p4 = scmp.eq.s32.totalorder %s941_s17, 0 }
  0x2e   : > { %s1268_s28 = smov (%p30_p1, %s29_s28), 0  ;;  %p1254_p8 = scmp.ne.s32.totalorder %s1248_s21, 0 }
  0x2f   : > { %p1063_p6 = por %p47_p4, %p46_p2  ;;  %s36_s30 = ssub.s32 %s937_s16, %s1268_s28 }
  0x30   : > { %p1069_p10 = por %p1254_p8, %p46_p2  ;;  %p741_p12 = scmp.lt.s32.totalorder %s941_s17, 2 }
  0x31   : > { %p37_p11 = scmp.eq.s32.totalorder %s36_s30, 0  ;;  %s177_s26 = sand.u32 1, %s929_s14  }
  0x32   : > { %s569_s4 = sshll.u32 %s177_s26, 7  ;;  %s582_s6 = sshll.u32 %s937_s16, 11 }
  0x33   : > { %s1078_s5 = scalar_select %p37_p11, %s929_s14, %s39_s25  }
  0x34   : > { %s1084_s9 = scalar_lea.hbm %s1239_s0, %s582_s6  ;;  %s181_s21 = scalar_lea.vmem [#allocation2], %s569_s4 }
  0x35   : > { %s188_s18 = sshll.u32 %s181_s21, 4  ;;  %p1090_p13 = pnand %p741_p12, %p1063_p6  ;;  %s1086_s18 = int_to_ptr.vmem [resolvable:$true] %s188_s18 }
  0x36   : > { %s1094_s25 = scalar_lea.sflag [#allocation3], %s177_s26  ;;  %s825_s30 = scalar_lea.hbm %s1084_s9, 2048 }
  0x37   : > { %p826_p0 = scmp.ne.s32.totalorder %s1084_s9, %s825_s30  ;;  %p827_p3 = pneg %p1090_p13 }
  0x38   : > { %s830_s29 = scalar_lea.hbm %s1239_s0, 4096  ;;  %p831_p9 = scmp.lt.u32.totalorder %s1084_s9, %s1239_s0 }
  0x39   : > { %p828_p5 = pnand %p827_p3, %p826_p0  ;;  %p832_p1 = scmp.lt.u32.totalorder %s830_s29, %s825_s30 }
  0x3a   : > { %p834_p4 = scmp.lt.u32.totalorder %s825_s30, %s1084_s9 }
  0x3b   : > { %p829_p7 = pneg %p828_p5  ;;  %p833_p2 = por %p832_p1, %p831_p9 }
  0x3d   : > { %p835_p6 = por %p834_p4, %p833_p2 }
  0x3f   : > { %p836_p8 = pnand %p835_p6, %p829_p7 }
  0x41   : > { %839 = shalt.err (!%p836_p8)
}
  0x42   : > { %s840_s26 = scalar_lea.vmem %s1086_s18, 2048  ;;  %s946_s21 = smov [#allocation2]  }
  0x43   : > { %p841_p12 = scmp.ne.s32.totalorder %s1086_s18, %s840_s26  ;;  %s845_s4 = sshll.u32 %s946_s21, 4  ;;  %s846_s4 = int_to_ptr.vmem [resolvable:$false] %s845_s4 }
  0x44   : > { %s847_s6 = scalar_lea.vmem %s846_s4, 4096  ;;  %p848_p5 = scmp.lt.s32.totalorder %s1086_s18, %s846_s4 }
  0x45   : > { %p843_p11 = pnand %p841_p12, %p827_p3  ;;  %p849_p9 = scmp.lt.s32.totalorder %s847_s6, %s840_s26 }
  0x47   : > { %p844_p0 = pneg %p843_p11  ;;  %p850_p1 = por %p849_p9, %p848_p5 }
  0x49   : > { %p851_p2 = pnand %p850_p1, %p844_p0 }
  0x4b   : > { %854 = shalt.err (!%p851_p2)
}
  0x4c   : > { %735 = dma.hbm_to_vmem [thread:$0]  (!%p1090_p13), %s1084_s9, 2048, %s1086_s18, %s1094_s25, %s944_s10, %s944_s10, %s945_s11  }
  0x4d   : > { %p1257_p3 = scmp.ne.s32.totalorder %s1251_s24, 0 }
  0x4e   : > { %s1128_s30 = sand.u32 (!%p1257_p3), 1, %s925_s13   ;;  %p1258_p7 = scmp.ne.s32.totalorder (!%p1257_p3), %s1249_s22, 0 }
  0x4f   : > { %200 = sbr.rel (%p1257_p3) target bundleno = 367 (0x16f), region = 32  ;;  %s573_s29 = sshll.u32 (!%p1257_p3), %s1128_s30, 7 }
  0x50   : > { %s203_s7 = scalar_lea.sflag (!%p1257_p3), [#allocation3], %s1128_s30  ;;  %s1134_s19 = scalar_lea.vmem (!%p1257_p3), [#allocation2], %s573_s29 }
  0x56   : > { %908 = dma.done.wait (%p1258_p7), %s203_s7, 2048  }
  0x57   : > { %910 = vsyncadd (%p1258_p7), %s203_s7, 4294965248  ;;  %p1259_p13 = scmp.ne.s32.totalorder %s1247_s20, 0 }
  0x59   : > { %912 = dma.done.wait (%p1259_p13), [#allocation6], 2048  }
  0x5a   : > { %914 = vsyncadd (%p1259_p13), [#allocation6], 4294965248  ;;  %v257_v0 = vld [vmem:[#allocation5] sm:$0xff]  ;;  %v258_v1 = vld [vmem:[#allocation5 + $0x8] sm:$0xff]  ;;  %s1165_s24 = scalar_lea.vmem [#allocation7], %s573_s29  ;;  %s583_s10 = sshll.u32 %s933_s15, 11 }
  0x5b   : > { %v259_v2 = vld [vmem:[#allocation5 + $0x10] sm:$0xff]  ;;  %v672_v3 = vpack.c.bf16 %v258_v1, %v257_v0  ;;  %v260_v4 = vld [vmem:[#allocation5 + $0x18] sm:$0xff]  ;;  %v261_v6 = vld [vmem:[#allocation5 + $0x20] sm:$0xff]  ;;  %s456_s11 = sshll.u32 %s1165_s24, 4  ;;  %s1184_s15 = scalar_lea.hbm %s1242_s3, %s583_s10  ;;  %s1186_s11 = int_to_ptr.vmem [resolvable:$true] %s456_s11 }
  0x5c   : > { %v676_v5 = vpack.c.bf16 %v260_v4, %v259_v2  ;;  %v262_v7 = vld [vmem:[#allocation5 + $0x28] sm:$0xff]  ;;  %v241_v9 = vld [vmem:[%s1134_s19] sm:$0xff]  ;;  %v263_v11 = vld [vmem:[#allocation5 + $0x30] sm:$0xff]  ;;  %s442_s25 = scalar_lea.sflag [#allocation4], %s1128_s30  ;;  %s855_s8 = scalar_lea.vmem %s1186_s11, 2048 }
  0x5d   : > { %673 = vmatprep.subr.bf16.mxu0 %v672_v3  ;;  %704 = vmatprep.subr.bf16.mxu1 %v672_v3  ;;  %v680_v8 = vpack.c.bf16 %v262_v7, %v261_v6  ;;  %v249_v10 = vld [vmem:[%s1134_s19 + $0x40] sm:$0xff]  ;;  %v264_v12 = vld [vmem:[#allocation5 + $0x38] sm:$0xff]  ;;  %v266_v15 = vld [vmem:[#allocation5 + $0x48] sm:$0xff]  ;;  %p856_p4 = scmp.ne.s32.totalorder %s1186_s11, %s855_s8  ;;  %s947_s26 = smov [#allocation7]  }
  0x5e   : > { %675 = vmatpush3.bf16.msra.mxu0 %v672_v3  ;;  %712 = vmatpush3.bf16.msra.mxu1 %v672_v3  ;;  %v684_v13 = vpack.c.bf16 %v264_v12, %v263_v11  ;;  %v265_v14 = vld [vmem:[#allocation5 + $0x40] sm:$0xff]  ;;  %v267_v17 = vld [vmem:[#allocation5 + $0x50] sm:$0xff]  ;;  %v268_v18 = vld [vmem:[#allocation5 + $0x58] sm:$0xff]  ;;  %s859_s21 = sshll.u32 %s947_s26, 4  ;;  %s860_s21 = int_to_ptr.vmem [resolvable:$false] %s859_s21 }
  0x5f   : > { %677 = vmatprep.subr.bf16.mxu0 %v676_v5  ;;  %705 = vmatprep.subr.bf16.mxu1 %v676_v5  ;;  %v688_v16 = vpack.c.bf16 %v266_v15, %v265_v14  ;;  %v692_v19 = vpack.c.bf16 %v268_v18, %v267_v17  ;;  %v269_v20 = vld [vmem:[#allocation5 + $0x60] sm:$0xff]  ;;  %v270_v21 = vld [vmem:[#allocation5 + $0x68] sm:$0xff]  ;;  %v271_v23 = vld [vmem:[#allocation5 + $0x70] sm:$0xff]  ;;  %p857_p6 = pnand %p856_p4, %p1069_p10  ;;  %s861_s4 = scalar_lea.vmem %s860_s21, 4096 }
  0x60   : > { %648 = vmatprep.mubr.f32.mxu0 %v241_v9  ;;  %660 = vmatprep.mubr.f32.mxu1 %v249_v10  ;;  %v696_v22 = vpack.c.bf16 %v270_v21, %v269_v20  ;;  %v272_v24 = vld [vmem:[#allocation5 + $0x78] sm:$0xff]  ;;  %v242_v26 = vld [vmem:[%s1134_s19 + $0x8] sm:$0xff]  ;;  %v243_v28 = vld [vmem:[%s1134_s19 + $0x10] sm:$0xff]  ;;  %p862_p12 = scmp.lt.s32.totalorder %s1186_s11, %s860_s21  ;;  %p863_p11 = scmp.lt.s32.totalorder %s861_s4, %s855_s8 }
  0x61   : > { %v700_v25 = vpack.c.bf16 %v272_v24, %v271_v23  ;;  %v250_v27 = vld [vmem:[%s1134_s19 + $0x48] sm:$0xff]  ;;  %v251_v29 = vld [vmem:[%s1134_s19 + $0x50] sm:$0xff]  ;;  %v244_v30 = vld [vmem:[%s1134_s19 + $0x18] sm:$0xff]  ;;  %p858_p8 = pneg %p857_p6 }
  0x62   : > { %679 = vmatpush3.bf16.msra.mxu0 %v676_v5  ;;  %713 = vmatpush3.bf16.msra.mxu1 %v676_v5  ;;  %v252_v31 = vld [vmem:[%s1134_s19 + $0x58] sm:$0xff]  ;;  %v245_v32 = vld [vmem:[%s1134_s19 + $0x20] sm:$0xff]  ;;  %v246_v34 = vld [vmem:[%s1134_s19 + $0x28] sm:$0xff]  ;;  %p864_p0 = por %p863_p11, %p862_p12 }
  0x63   : > { %681 = vmatprep.subr.bf16.mxu0 %v680_v8  ;;  %706 = vmatprep.subr.bf16.mxu1 %v680_v8  ;;  %v253_v33 = vld [vmem:[%s1134_s19 + $0x60] sm:$0xff]  ;;  %v254_v35 = vld [vmem:[%s1134_s19 + $0x68] sm:$0xff]  ;;  %v247_v36 = vld [vmem:[%s1134_s19 + $0x30] sm:$0xff] }
  0x64   : > { %v255_v37 = vld [vmem:[%s1134_s19 + $0x70] sm:$0xff]  ;;  %v248_v38 = vld [vmem:[%s1134_s19 + $0x38] sm:$0xff]  ;;  %v576_v40 = vld [vmem:[%s1241_s2] ss:$0 sm:$0xff]  ;;  %p865_p5 = pnand %p864_p0, %p858_p8 }
  0x65   : > { %v256_v39 = vld [vmem:[%s1134_s19 + $0x78] sm:$0xff] }
  0x66   : > { %683 = vmatpush3.bf16.msra.mxu0 %v680_v8  ;;  %714 = vmatpush3.bf16.msra.mxu1 %v680_v8 }
  0x67   : > { %685 = vmatprep.subr.bf16.mxu0 %v684_v13  ;;  %707 = vmatprep.subr.bf16.mxu1 %v684_v13 }
  0x6a   : > { %687 = vmatpush3.bf16.msra.mxu0 %v684_v13  ;;  %715 = vmatpush3.bf16.msra.mxu1 %v684_v13 }
  0x6b   : > { %689 = vmatprep.subr.bf16.mxu0 %v688_v16  ;;  %708 = vmatprep.subr.bf16.mxu1 %v688_v16 }
  0x6e   : > { %691 = vmatpush3.bf16.msra.mxu0 %v688_v16  ;;  %716 = vmatpush3.bf16.msra.mxu1 %v688_v16 }
  0x6f   : > { %693 = vmatprep.subr.bf16.mxu0 %v692_v19  ;;  %709 = vmatprep.subr.bf16.mxu1 %v692_v19 }
  0x72   : > { %695 = vmatpush3.bf16.msra.mxu0 %v692_v19  ;;  %717 = vmatpush3.bf16.msra.mxu1 %v692_v19 }
  0x73   : > { %697 = vmatprep.subr.bf16.mxu0 %v696_v22  ;;  %710 = vmatprep.subr.bf16.mxu1 %v696_v22 }
  0x76   : > { %699 = vmatpush3.bf16.msra.mxu0 %v696_v22  ;;  %718 = vmatpush3.bf16.msra.mxu1 %v696_v22 }
  0x77   : > { %701 = vmatprep.subr.bf16.mxu0 %v700_v25  ;;  %711 = vmatprep.subr.bf16.mxu1 %v700_v25 }
  0x7a   : > { %703 = vmatpush3.bf16.msra.mxu0 %v700_v25  ;;  %719 = vmatpush3.bf16.msra.mxu1 %v700_v25 }
  0x7d   : > { %649 = vmatmul.mubr.f32.vlgmr.msra.gmra.mrb[0].mxu0 %v242_v26  ;;  %661 = vmatmul.mubr.f32.vlgmr.msra.gmra.mrb[0].mxu1 %v250_v27 }
  0x7e   : > { %651 = vmatprep.mubr.f32.mxu0 %v243_v28  ;;  %663 = vmatprep.mubr.f32.mxu1 %v251_v29 }
  0x81   : > { %652 = vmatmul.mubr.f32.gmra.mrb[2].mxu0 %v244_v30  ;;  %664 = vmatmul.mubr.f32.gmra.mrb[2].mxu1 %v252_v31 }
  0x82   : > { %654 = vmatprep.mubr.f32.mxu0 %v245_v32  ;;  %666 = vmatprep.mubr.f32.mxu1 %v253_v33 }
  0x85   : > { %655 = vmatmul.mubr.f32.gmra.mrb[4].mxu0 %v246_v34  ;;  %667 = vmatmul.mubr.f32.gmra.mrb[4].mxu1 %v254_v35 }
  0x86   : > { %657 = vmatprep.mubr.f32.mxu0 %v247_v36  ;;  %669 = vmatprep.mubr.f32.mxu1 %v255_v37 }
  0x89   : > { %658 = vmatmul.mubr.f32.gmra.mrb[6].mxu0 %v248_v38  ;;  %670 = vmatmul.mubr.f32.gmra.mrb[6].mxu1 %v256_v39 }
 0x150   : > { %v650_v41 = vpop.f32.mrb[0].mxu0  ;;  %v662_v42 = vpop.f32.mrb[0].mxu1 }
 0x151   : > { %v352_v43 = vadd.f32 %v650_v41, %v576_v40  ;;  %v392_v44 = vadd.f32 %v662_v42, %v576_v40  ;;  %v346_v45 = vpop.f32.mrb[1].mxu0  ;;  %v386_v46 = vpop.f32.mrb[1].mxu1 }
 0x152   : > { %v347_v47 = vadd.f32 %v576_v40, %v346_v45  ;;  %v387_v48 = vadd.f32 %v576_v40, %v386_v46 }
 0x153   : > { %426 = vst [vmem:[%s1165_s24 + $0x8] sm:$0xff] %v352_v43  ;;  %434 = vst [vmem:[%s1165_s24 + $0x48] sm:$0xff] %v392_v44 }
 0x154   : > { %425 = vst [vmem:[%s1165_s24] sm:$0xff] %v347_v47  ;;  %433 = vst [vmem:[%s1165_s24 + $0x40] sm:$0xff] %v387_v48  ;;  %v653_v49 = vpop.f32.mrb[2].mxu0  ;;  %v665_v50 = vpop.f32.mrb[2].mxu1 }
 0x155   : > { %v362_v51 = vadd.f32 %v653_v49, %v576_v40  ;;  %v402_v52 = vadd.f32 %v665_v50, %v576_v40  ;;  %v356_v53 = vpop.f32.mrb[3].mxu0  ;;  %v396_v54 = vpop.f32.mrb[3].mxu1 }
 0x156   : > { %v357_v55 = vadd.f32 %v576_v40, %v356_v53  ;;  %v397_v56 = vadd.f32 %v576_v40, %v396_v54 }
 0x157   : > { %428 = vst [vmem:[%s1165_s24 + $0x18] sm:$0xff] %v362_v51  ;;  %436 = vst [vmem:[%s1165_s24 + $0x58] sm:$0xff] %v402_v52 }
 0x158   : > { %427 = vst [vmem:[%s1165_s24 + $0x10] sm:$0xff] %v357_v55  ;;  %435 = vst [vmem:[%s1165_s24 + $0x50] sm:$0xff] %v397_v56  ;;  %v656_v57 = vpop.f32.mrb[4].mxu0  ;;  %v668_v58 = vpop.f32.mrb[4].mxu1 }
 0x159   : > { %v372_v59 = vadd.f32 %v656_v57, %v576_v40  ;;  %v412_v60 = vadd.f32 %v668_v58, %v576_v40  ;;  %v366_v61 = vpop.f32.mrb[5].mxu0  ;;  %v406_v62 = vpop.f32.mrb[5].mxu1 }
 0x15a   : > { %v367_v63 = vadd.f32 %v576_v40, %v366_v61  ;;  %v407_v0 = vadd.f32 %v576_v40, %v406_v62 }
 0x15b   : > { %430 = vst [vmem:[%s1165_s24 + $0x28] sm:$0xff] %v372_v59  ;;  %438 = vst [vmem:[%s1165_s24 + $0x68] sm:$0xff] %v412_v60 }
 0x15c   : > { %429 = vst [vmem:[%s1165_s24 + $0x20] sm:$0xff] %v367_v63  ;;  %437 = vst [vmem:[%s1165_s24 + $0x60] sm:$0xff] %v407_v0  ;;  %v659_v1 = vpop.f32.mrb[6].mxu0  ;;  %v671_v2 = vpop.f32.mrb[6].mxu1 }
 0x15d   : > { %v382_v3 = vadd.f32 %v659_v1, %v576_v40  ;;  %v422_v4 = vadd.f32 %v671_v2, %v576_v40  ;;  %v376_v5 = vpop.f32.mrb[7].mxu0  ;;  %v416_v6 = vpop.f32.mrb[7].mxu1 }
 0x15e   : > { %v377_v7 = vadd.f32 %v576_v40, %v376_v5  ;;  %v417_v8 = vadd.f32 %v576_v40, %v416_v6 }
 0x15f   : > { %432 = vst [vmem:[%s1165_s24 + $0x38] sm:$0xff] %v382_v3  ;;  %440 = vst [vmem:[%s1165_s24 + $0x78] sm:$0xff] %v422_v4 }
 0x160   : > { %431 = vst [vmem:[%s1165_s24 + $0x30] sm:$0xff] %v377_v7  ;;  %439 = vst [vmem:[%s1165_s24 + $0x70] sm:$0xff] %v417_v8 }
 0x161   : > { %868 = shalt.err (!%p865_p5)
}
 0x162   : > { %s869_s6 = scalar_lea.hbm %s1184_s15, 2048  ;;  %s873_s19 = scalar_lea.hbm %s1242_s3, 4096 }
 0x163   : > { %p870_p9 = scmp.ne.s32.totalorder %s1184_s15, %s869_s6  ;;  %p874_p3 = scmp.lt.u32.totalorder %s1184_s15, %s1242_s3 }
 0x164   : > { %p875_p7 = scmp.lt.u32.totalorder %s873_s19, %s869_s6  ;;  %p877_p4 = scmp.lt.u32.totalorder %s869_s6, %s1184_s15 }
 0x165   : > { %p871_p1 = pnand %p870_p9, %p1069_p10 }
 0x166   : > { %p876_p13 = por %p875_p7, %p874_p3 }
 0x167   : > { %p872_p2 = pneg %p871_p1 }
 0x168   : > { %p878_p6 = por %p877_p4, %p876_p13 }
 0x16a   : > { %p879_p8 = pnand %p878_p6, %p872_p2 }
 0x16c   : > { %882 = shalt.err (!%p879_p8)
}
 0x16d   : > { %s948_s24 = smov 128   ;;  %s949_s10 = smov 8  }
 0x16e   : > { %726 = dma.vmem_to_hbm [thread:$0]  (%p1069_p10), %s1186_s11, 2048, %s1184_s15, %s442_s25, %s948_s24, %s948_s24, %s949_s10  }
 0x16f PF: > { %s471_s9 = sand.u32 1, %s921_s12   ;;  %p1260_p12 = scmp.ne.s32.totalorder %s1250_s23, 0 }
 0x170   : > { %p1261_p11 = scmp.ge.s32.totalorder %s941_s17, 2  ;;  %s472_s18 = scalar_lea.sflag [#allocation4], %s471_s9 }
 0x172   : > { %p737_p0 = pnand %p1261_p11, %p1260_p12 }
 0x174   : > { %916 = dma.done.wait (!%p737_p0), %s472_s18, 2048  }
 0x175   : > { %918 = vsyncadd (!%p737_p0), %s472_s18, 4294965248  ;;  %s20_s17 = sadd.s32 1, %s941_s17   ;;  %s1262_s12 = smov %s925_s13 }
 0x176   : > { %p17_p5 = scmp.ge.s32.totalorder %s20_s17, 4   ;;  %s1263_s13 = smov %s929_s14 }
 0x177   : > { %s1264_s14 = smov %s1078_s5  ;;  %s1265_s15 = smov %s937_s16 }
 0x178   : > { %s1266_s16 = smov %s1268_s28  ;;  %19 = sbr.rel (!%p17_p5) target bundleno = 7 (0x7), region = 85 }
 0x17f   :  { %477 = vsyncpa [#allocation3], 1 }
 0x180   :  { %479 = vsyncpa [#allocation3 + $0x1], 1 }
 0x181   :  { %480 = vsyncpa [#allocation6], 1 }
 0x182   :  { %481 = vsyncpa [#allocation4], 1 }
 0x183   :  { %483 = vsyncpa [#allocation4 + $0x1], 1 }

</bundles_post_ra>
